<compile_context>
chip_gen: v5e
topology: v5e:2x2
jax: 0.10.0
libtpu: 0.0.40
codegen_flags: <defaults>
</compile_context>

<pallas_src>
import jax
import jax.numpy as jnp
from jax.experimental import pallas as pl
from jax.experimental.pallas import tpu as pltpu

# Layer widths straight from ToyModel.__init__
LAYER_DIMS = [10, 100, 100, 100, 100, 1000, 1000, 100, 100, 100, 100, 10, 2, 1]
N_LAYERS = len(LAYER_DIMS) - 1  # 13 linear layers

D_IN = LAYER_DIMS[0]    # 10
D_OUT = LAYER_DIMS[-1]  # 1
LANE = 128              # lane width: weight padded to this on the output axis
SUBLANE = 8             # f32 sublane height: batch padded to a multiple of this
TILE_B_MAX = 1024       # review: 1024-2048 on v6e/v7x, 512 enough on v5e


def _round_up(n, m):
    return ((n + m - 1) // m) * m


def fold_affine_chain(weights, biases):
    """Collapse the activation-free Linear chain into one affine map.

    weights[i]: (in_i, out_i) f32 (pre-transposed vs PyTorch's (out, in)),
    biases[i]:  (1, out_i)   f32.
    Uses Precision.HIGHEST so no bf16 matmul passes creep into the folded
    constants (correctness concern from the review). Runs once, off the hot
    path.
    """
    hi = jax.lax.Precision.HIGHEST
    w_eff = weights[0]
    b_eff = biases[0]
    for w, b in zip(weights[1:], biases[1:]):
        w_eff = jnp.matmul(w_eff, w, precision=hi)
        b_eff = jnp.matmul(b_eff, w, precision=hi) + b
    return w_eff, b_eff


def prepare_toy_model_params(weights, biases):
    """One-time (hoisted) prep: fold the 13 layers, lane-pad the weight.

    Returns:
      w_pad: (10, 128) f32 — column 0 holds W_eff, rest zero (lane-dense MXU
             operand, DMA'd once and VMEM-resident across the whole grid).
      b_eff: (1, 1) f32 — the single effective bias.
    """
    w_eff, b_eff = fold_affine_chain(weights, biases)          # (10,1), (1,1)
    w_pad = jnp.zeros((D_IN, LANE), jnp.float32).at[:, :D_OUT].set(w_eff)
    return w_pad, b_eff


def affine_kernel(x_ref, w_ref, b_ref, o_ref):
    """Per batch tile: one lane-dense (tile_b,10)@(10,128) MXU push + VPU bias
    add; only lane 0 (the true width-1 output) is stored."""
    y = jnp.dot(x_ref[...], w_ref[...],
                preferred_element_type=jnp.float32,
                precision=jax.lax.Precision.HIGHEST)           # (tile_b, 128)
    o_ref[...] = (y[:, :D_OUT] + b_ref[...]).astype(o_ref.dtype)


def toy_model_forward(x, w_pad, b_eff, *, tile_b_max=TILE_B_MAX):
    """ToyModel.forward: x (B, 10) f32 -> (B, 1) f32 (params pre-folded)."""
    assert x.shape[-1] == D_IN
    B = x.shape[0]

    # Pad batch only to the next sublane multiple (no tile_b-sized over-pad).
    b8 = _round_up(B, SUBLANE)
    if b8 != B:
        x = jnp.pad(x, ((0, b8 - B), (0, 0)))

    # tile_b: large enough to amortize per-step pipeline overhead, capped at
    # ~B/2 so large batches always give >=2 grid steps for v7x's two
    # TensorCores ("parallel" batch axis). Multiple of 8 (f32 sublane).
    tile_b = max(SUBLANE, min(tile_b_max, _round_up(pl.cdiv(b8, 2), SUBLANE)))
    grid = (pl.cdiv(b8, tile_b),)   # non-dividing tail tile handled by Pallas

    out = pl.pallas_call(
        affine_kernel,
        out_shape=jax.ShapeDtypeStruct((b8, D_OUT), x.dtype),
        grid_spec=pltpu.PrefetchScalarGridSpec(
            num_scalar_prefetch=0,
            grid=grid,
            in_specs=[
                # Activation tiles stream over the grid; last dim == full array
                # dim (10), so no 128-lane inflation of x in the wrapper.
                pl.BlockSpec((tile_b, D_IN), lambda i: (i, 0)),
                # Constant index_map -> weight/bias DMA'd once, VMEM-resident
                # across all batch tiles. (pl.Buffered(1) would save one spare
                # ~6 KB buffer; left at default for lowering robustness.)
                pl.BlockSpec((D_IN, LANE), lambda i: (0, 0)),
                pl.BlockSpec((1, 1), lambda i: (0, 0)),
            ],
            # Full-dim width-1 output: no 128x-inflated HBM write and no
            # post-kernel feature slice.
            out_specs=pl.BlockSpec((tile_b, D_OUT), lambda i: (i, 0)),
        ),
        compiler_params=pltpu.CompilerParams(
            dimension_semantics=("parallel",),   # batch tiles split across TCs
            vmem_limit_bytes=32 * 1024 * 1024,   # far above the <1 MiB need
        ),
    )(x, w_pad, b_eff)

    # Only batch padding (if any) is sliced away.
    return out[:B]


def init_params(key):
    """Deterministic init mimicking PyTorch's default Linear init
    (uniform(-1/sqrt(fan_in), 1/sqrt(fan_in)))."""
    weights, biases = [], []
    for i in range(N_LAYERS):
        fan_in, fan_out = LAYER_DIMS[i], LAYER_DIMS[i + 1]
        key, kw, kb = jax.random.split(key, 3)
        bound = 1.0 / jnp.sqrt(jnp.float32(fan_in))
        # stored as (in, out) == transpose of PyTorch's (out, in) weight
        w = jax.random.uniform(kw, (fan_in, fan_out), jnp.float32,
                               minval=-bound, maxval=bound)
        b = jax.random.uniform(kb, (1, fan_out), jnp.float32,
                               minval=-bound, maxval=bound)
        weights.append(w)
        biases.append(b)
    return weights, biases


if __name__ == "__main__":
    key = jax.random.PRNGKey(0)
    key, kx = jax.random.split(key)

    batch = 2
    x = jax.random.normal(kx, (batch, D_IN), dtype=jnp.float32)

    weights, biases = init_params(key)

    # Hoisted one-time prep (review item 1): fold + pad once, reuse per call.
    w_pad, b_eff = jax.block_until_ready(
        prepare_toy_model_params(weights, biases))

    fwd = jax.jit(toy_model_forward)
    out = jax.block_until_ready(fwd(x, w_pad, b_eff))

    # Reference: the literal 13-layer chain in plain JAX, true f32.
    hi = jax.lax.Precision.HIGHEST
    ref = x
    for w, b in zip(weights, biases):
        ref = jnp.matmul(ref, w, precision=hi) + b

    assert out.shape == (batch, D_OUT)
    assert jnp.allclose(out, ref, atol=1e-4, rtol=1e-4), (out, ref)

    print("KERNEL_OK")
</pallas_src>

<mosaic_0001>
module attributes {stable_mosaic.version = 11 : i64} {
  func.func @affine_kernel(%arg0: i32, %arg1: memref<8x10xf32, #tpu.memory_space<vmem>>, %arg2: memref<10x128xf32, #tpu.memory_space<vmem>>, %arg3: memref<1x1xf32, #tpu.memory_space<vmem>>, %arg4: memref<8x1xf32, #tpu.memory_space<vmem>>) attributes {dimension_semantics = [#tpu.dimension_semantics<parallel>], iteration_bounds = array<i64: 1>, scalar_prefetch = 0 : i64, scratch_operands = 0 : i64, tpu.core_type = #tpu.core_type<tc>, window_params = [{transform_indices = @transform_0, window_bounds = array<i64: 8, 10>}, {pipeline_mode = #tpu.pipeline_mode<synchronous>, transform_indices = @transform_1, window_bounds = array<i64: 10, 128>}, {pipeline_mode = #tpu.pipeline_mode<synchronous>, transform_indices = @transform_2, window_bounds = array<i64: 1, 1>}, {transform_indices = @transform_3, window_bounds = array<i64: 8, 1>}]} {
    %c0 = arith.constant 0 : index
    %c0_0 = arith.constant 0 : index
    %0 = vector.load %arg1[%c0, %c0_0] : memref<8x10xf32, #tpu.memory_space<vmem>>, vector<8x10xf32>
    %c0_1 = arith.constant 0 : index
    %c0_2 = arith.constant 0 : index
    %1 = vector.load %arg2[%c0_1, %c0_2] : memref<10x128xf32, #tpu.memory_space<vmem>>, vector<10x128xf32>
    %cst = arith.constant dense<0.000000e+00> : vector<8x128xf32>
    %2 = tpu.matmul %0, %1, %cst {dimension_numbers = #tpu.dot_dimension_numbers<[1], [0], [0], [1], [0, 0, 1, 1], [], []>, precision = #tpu.contract_precision<fp32>} : vector<8x10xf32>, vector<10x128xf32>, vector<8x128xf32> -> vector<8x128xf32>
    %3 = vector.extract_strided_slice %2 {offsets = [0, 0], sizes = [8, 1], strides = [1, 1]} : vector<8x128xf32> to vector<8x1xf32>
    %c0_3 = arith.constant 0 : index
    %c0_4 = arith.constant 0 : index
    %4 = vector.load %arg3[%c0_3, %c0_4] : memref<1x1xf32, #tpu.memory_space<vmem>>, vector<1x1xf32>
    %5 = vector.broadcast %4 : vector<1x1xf32> to vector<8x1xf32>
    %6 = arith.addf %3, %5 : vector<8x1xf32>
    %c0_5 = arith.constant 0 : index
    %c0_6 = arith.constant 0 : index
    %7 = vector.load %arg4[%c0_5, %c0_6] : memref<8x1xf32, #tpu.memory_space<vmem>>, vector<8x1xf32>
    tpu.vector_store %arg4[%c0_5, %c0_6], %6 {strides = array<i32>} : memref<8x1xf32, #tpu.memory_space<vmem>>, vector<8x1xf32>,
    return
  }
  func.func @transform_0(%arg0: i32) -> (i32, i32) {
    %c0_i32 = arith.constant 0 : i32
    %c0_i32_0 = arith.constant 0 : i32
    return %arg0, %c0_i32 : i32, i32
  }
  func.func @transform_1(%arg0: i32) -> (i32, i32) {
    %c0_i32 = arith.constant 0 : i32
    %c0_i32_0 = arith.constant 0 : i32
    %c0_i32_1 = arith.constant 0 : i32
    return %c0_i32, %c0_i32_0 : i32, i32
  }
  func.func @transform_2(%arg0: i32) -> (i32, i32) {
    %c0_i32 = arith.constant 0 : i32
    %c0_i32_0 = arith.constant 0 : i32
    %c0_i32_1 = arith.constant 0 : i32
    return %c0_i32, %c0_i32_0 : i32, i32
  }
  func.func @transform_3(%arg0: i32) -> (i32, i32) {
    %c0_i32 = arith.constant 0 : i32
    %c0_i32_0 = arith.constant 0 : i32
    return %arg0, %c0_i32 : i32, i32
  }
}

</mosaic_0001>

<bundles_post_ra>
// kernel: toy_model_forward.1
= control target key start
LH: loop header
LB: loop body
LE: loop exit
PB: predicated region body
PF: predicated region fallthrough
CT: control target
= control target key end

     0   :  { %s279_s0 = inlined_call_operand.vmem [shape: f32[8,10], index: 0, kind: input, shape index: {}]   ;;  %s280_s1 = inlined_call_operand.hbm [shape: f32[10,128], index: 1, kind: input, shape index: {}]   ;;  %s281_s2 = inlined_call_operand.<no memory space> [shape: f32[1,1], index: 2, kind: input, shape index: {}]   ;;  %s282_s3 = inlined_call_operand.vmem [shape: f32[8,1], index: 3, kind: output, shape index: {}]  }
   0x1   :  { %v8_v0 = vstv %s281_s2 }
   0x2   :  { %9 = vst [vmem:[#allocation2] sm:$0x1] %v8_v0 }
   0x3   :  { %10 = vsyncpa [#allocation4], 0  ;;  %s17_s16 = sshll.u32 %s280_s1, 4  ;;  %s244_s17 = smov [#allocation3]   ;;  %s18_s16 = int_to_ptr.hbm [resolvable:$true] %s17_s16 }
   0x4   :  { %s19_s18 = sshll.u32 %s244_s17, 4  ;;  %s245_s19 = smov 128   ;;  %s20_s18 = int_to_ptr.vmem [resolvable:$true] %s19_s18 }
   0x5   :  { %s246_s20 = smov 8  }
   0x6   :  { %25 = dma.hbm_to_vmem [thread:$0]  %s18_s16, 256, %s20_s18, [#allocation4], %s245_s19, %s245_s19, %s246_s20  }
   0x7   :  { %242 = dma.done.wait [#allocation4], 256  }
   0x8   :  { %243 = vsyncadd [#allocation4], 4294967040  ;;  %vm39_vm0 = vcmask 1041408   ;;  %vm35_vm1 = vcmask 80896   ;;  %v34_v1 = vld [vmem:[#allocation3 + $0x8] sm:$0x3] }
   0x9   :  { %v33_v2 = vld [vmem:[#allocation3] sm:$0xff]  ;;  %v41_v4 = vsel %vm39_vm0, %v34_v1, 0  ;;  %v217_v30 = vld [vmem:[#allocation2] ss:$0 sm:$0xff]  ;;  %vm207_vm2 = vcmask 7168  }
   0xa   :  { %v32_v3 = vld [vmem:[%s279_s0] sm:$0xff]  ;;  %v59_v5 = vand.u32 4294901760, %v33_v2  ;;  %v57_v7 = vand.u32 4294901760, %v41_v4 }
   0xb   :  { %v37_v6 = vsel %vm35_vm1, %v32_v3, 0 }
   0xc   :  { %v61_v8 = vand.u32 4294901760, %v37_v6  ;;  %v91_v9 = vsub.f32 %v33_v2, %v59_v5  ;;  %v85_v10 = vsub.f32 %v41_v4, %v57_v7  ;;  %58 = vmatpush.msra.mxu0 %v57_v7  ;;  %142 = vmatpush.msra.mxu3 %v57_v7 }
   0xe   :  { %v62_v11 = vsub.f32 %v37_v6, %v61_v8  ;;  %v92_v12 = vand.u32 4294901760, %v91_v9  ;;  %117 = vmatpush.msra.mxu2 %v85_v10  ;;  %60 = vmatpush.msra.mxu0 %v59_v5  ;;  %v86_v13 = vand.u32 4294901760, %v85_v10 }
   0xf   :  { %144 = vmatpush.msra.mxu3 %v59_v5 }
  0x10   :  { %v63_v14 = vand.u32 4294901760, %v62_v11  ;;  %v93_v15 = vsub.f32 %v91_v9, %v92_v12  ;;  %120 = vmatpush.msra.mxu2 %v91_v9  ;;  %v87_v16 = vsub.f32 %v85_v10, %v86_v13  ;;  %169 = vmatpush.msrb.mxu0 %v86_v13 }
  0x11   :  { %123 = vmatmul.f32.vlgmr.msra.gmra.mxu2 %v62_v11 }
  0x12   :  { %v64_v17 = vsub.f32 %v62_v11, %v63_v14  ;;  %148 = vmatmul.f32.vlgmr.msra.gmra.mxu3 %v63_v14  ;;  %v88_v18 = vand.u32 4294901760, %v87_v16  ;;  %v94_v20 = vand.u32 4294901760, %v93_v15  ;;  %173 = vmatpush.msrb.mxu0 %v92_v12 }
  0x14   :  { %v65_v19 = vand.u32 4294901760, %v64_v17  ;;  %89 = vmatpush.msra.mxu1 %v88_v18 }
  0x16   :  { %66 = vmatmul.f32.vlgmr.msra.gmra.mxu0 %v65_v19  ;;  %95 = vmatpush.msra.mxu1 %v94_v20 }
  0x17   :  { %97 = vmatmul.f32.vlgmr.msra.gmra.mxu1 %v61_v8 }
  0x18   :  { %194 = vmatpush.msrb.mxu1 %v57_v7 }
  0x1a   :  { %196 = vmatpush.msrb.mxu1 %v59_v5 }
  0x1e   :  { %175 = vmatmul.f32.vlgmr.msrb.gmra.mxu0 %v61_v8 }
  0x1f   :  { %198 = vmatmul.f32.vlgmr.msrb.gmra.mxu1 %v61_v8 }
  0x93   :  { %v67_v21 = vpop.f32.mrf.mxu0 }
  0x94   :  { %v98_v22 = vpop.f32.mrf.mxu1  ;;  %v124_v23 = vpop.f32.mrf.mxu2 }
  0x95   :  { %v99_v24 = vadd.f32 %v98_v22, %v67_v21  ;;  %v149_v25 = vpop.f32.mrf.mxu3 }
  0x97   :  { %v125_v26 = vadd.f32 %v124_v23, %v99_v24 }
  0x99   :  { %v150_v27 = vadd.f32 %v149_v25, %v125_v26 }
  0x9b   :  { %v176_v28 = vpop.f32.mrf.mxu0 }
  0x9c   :  { %v177_v29 = vadd.f32 %v176_v28, %v150_v27  ;;  %v199_v31 = vpop.f32.mrf.mxu1 }
  0x9e   :  { %v200_v32 = vadd.f32 %v199_v31, %v177_v29 }
  0xa0   :  { %v206_v33 = vadd.f32 %v217_v30, %v200_v32 }
  0xa2   :  { %208 = vst.msk [vmem:[%s282_s3] sm:$0xff] %vm207_vm2, %v206_v33 }
  0xa3   :  { %213 = vsyncpa [#allocation4], 1 }

</bundles_post_ra>
